<compile_context>
chip_gen: v7x
topology: tpu7x:2x2x1
jax: 0.10.0
libtpu: 0.0.40
codegen_flags: <defaults>
</compile_context>

<pallas_src>
import math
import functools

import jax
import jax.numpy as jnp
from jax.experimental import pallas as pl
from jax.experimental.pallas import tpu as pltpu


def _gelu_tanh(x):
    # matches torch.nn.GELU(approximate='tanh')
    c = math.sqrt(2.0 / math.pi)
    return 0.5 * x * (1.0 + jnp.tanh(c * (x + 0.044715 * x * x * x)))


def mlp_kernel(x_ref, w_fc_ref, b_fc_ref, w_proj_ref, b_proj_ref, o_ref):
    # x_ref: (tm, C) bf16     w_fc_ref: (C, 4C) bf16     b_fc_ref: (1, 4C) f32
    # w_proj_ref: (4C, C) bf16   b_proj_ref: (1, C) f32   o_ref: (tm, C) f32
    x = x_ref[...]

    # c_fc : (tm, C) @ (C, 4C) -> f32 accumulate on MXU
    h = jnp.dot(x, w_fc_ref[...], preferred_element_type=jnp.float32)
    h = h + b_fc_ref[...]                     # broadcast (1, 4C) bias, f32

    # GELU (tanh approx) in f32: tanh goes to the EUP slot, mul/add on the VPU
    h = _gelu_tanh(h)

    # c_proj : (tm, 4C) @ (4C, C) -> f32 accumulate on MXU (inputs bf16)
    h = h.astype(w_proj_ref.dtype)
    y = jnp.dot(h, w_proj_ref[...], preferred_element_type=jnp.float32)
    o_ref[...] = (y + b_proj_ref[...]).astype(o_ref.dtype)


def _choose_row_tile(m):
    # Largest row tile <= 256 (fills the 256-wide MXU on v6e/v7x, two 128-passes on v5e)
    # that is a multiple of 8 sublanes.
    for cand in (256, 128, 64, 32, 16, 8):
        if m >= cand:
            return cand
    return 8


@functools.partial(jax.jit, static_argnames=("compute_dtype",))
def mlp_pallas(x, w_fc, b_fc, w_proj, b_proj, *, compute_dtype=jnp.bfloat16):
    """x: (B, T, C) f32. w_fc: (C, 4C), b_fc: (4C,), w_proj: (4C, C), b_proj: (C,)."""
    B, T, C = x.shape
    H = w_fc.shape[1]                 # 4*C
    M = B * T

    tm = _choose_row_tile(M)
    n_tiles = pl.cdiv(M, tm)
    M_pad = n_tiles * tm

    x2 = x.reshape(M, C)
    if M_pad != M:
        x2 = jnp.pad(x2, ((0, M_pad - M), (0, 0)))

    # bf16 operands for the MXU; f32 biases.
    x2 = x2.astype(compute_dtype)
    w_fc_c = w_fc.astype(compute_dtype)
    w_proj_c = w_proj.astype(compute_dtype)
    b_fc2 = b_fc.reshape(1, H).astype(jnp.float32)
    b_proj2 = b_proj.reshape(1, C).astype(jnp.float32)

    # Explicit scoped-VMEM budget from the actual footprint (double-buffered tiles + weights
    # + f32 intermediates), capped below v7x's 64 MiB physical VMEM.
    bpe = jnp.dtype(compute_dtype).itemsize
    est = (2 * tm * C * bpe                     # x tiles (double-buffered)
           + 2 * tm * C * 4                     # out tiles (double-buffered, f32)
           + 2 * (C * H * bpe + H * C * bpe + H * 4 + C * 4)   # weights / biases
           + 4 * tm * H * 4)                    # f32 (tm, 4C) intermediates headroom
    vmem_limit = int(min(48 * 2**20, max(32 * 2**20, 2 * est)))

    out = pl.pallas_call(
        mlp_kernel,
        out_shape=jax.ShapeDtypeStruct((M_pad, C), jnp.float32),
        grid_spec=pltpu.PrefetchScalarGridSpec(
            num_scalar_prefetch=0,
            grid=(n_tiles,),
            in_specs=[
                pl.BlockSpec((tm, C), lambda i: (i, 0)),     # x row tile
                pl.BlockSpec((C, H), lambda i: (0, 0)),      # w_fc (resident)
                pl.BlockSpec((1, H), lambda i: (0, 0)),      # b_fc
                pl.BlockSpec((H, C), lambda i: (0, 0)),      # w_proj (resident)
                pl.BlockSpec((1, C), lambda i: (0, 0)),      # b_proj
            ],
            out_specs=pl.BlockSpec((tm, C), lambda i: (i, 0)),
        ),
        compiler_params=pltpu.CompilerParams(
            dimension_semantics=("parallel",),
            vmem_limit_bytes=vmem_limit,
        ),
    )(x2, w_fc_c, b_fc2, w_proj_c, b_proj2)

    return out[:M].reshape(B, T, C)


# ------------------------- pure-JAX f32 reference (for verification) -------------------------
def mlp_reference(x, w_fc, b_fc, w_proj, b_proj):
    h = x @ w_fc + b_fc
    c = math.sqrt(2.0 / math.pi)
    h = 0.5 * h * (1.0 + jnp.tanh(c * (h + 0.044715 * h ** 3)))
    return h @ w_proj + b_proj


def _make_params(key, C):
    H = 4 * C
    k1, k2, k3, k4 = jax.random.split(key, 4)
    std = 0.02
    w_fc = (std * jax.random.normal(k1, (C, H))).astype(jnp.float32)
    b_fc = (std * jax.random.normal(k2, (H,))).astype(jnp.float32)
    w_proj = (std * jax.random.normal(k3, (H, C))).astype(jnp.float32)
    b_proj = (std * jax.random.normal(k4, (C,))).astype(jnp.float32)
    return w_fc, b_fc, w_proj, b_proj


if __name__ == "__main__":
    key = jax.random.PRNGKey(0)

    # (B, T, C): toy shape implied by the module, a larger one exercising row tiling /
    # multi-step pipelining, and a non-multiple-of-tile shape exercising the padding path.
    test_shapes = [(2, 8, 32), (4, 128, 128), (3, 8, 32)]

    for idx, (B, T, C) in enumerate(test_shapes):
        kx, kp, key = jax.random.split(key, 3)
        x = jax.random.normal(kx, (B, T, C), dtype=jnp.float32)
        w_fc, b_fc, w_proj, b_proj = _make_params(kp, C)

        out = mlp_pallas(x, w_fc, b_fc, w_proj, b_proj)
        out = jax.block_until_ready(out)

        ref = mlp_reference(x, w_fc, b_fc, w_proj, b_proj)
        assert out.shape == ref.shape, f"shape mismatch for case {idx}"
        # bf16 matmul operands vs f32 reference -> loose-but-safe tolerance
        assert jnp.allclose(out, ref, atol=1e-2, rtol=1e-2), \
            f"mismatch vs pure-JAX reference for case {idx} (B={B}, T={T}, C={C})"

    print("KERNEL_OK")
</pallas_src>

<mosaic_0001>
module attributes {stable_mosaic.version = 11 : i64} {
  func.func @mlp_kernel(%arg0: i32, %arg1: memref<16x32xbf16, #tpu.memory_space<vmem>>, %arg2: memref<32x128xbf16, #tpu.memory_space<vmem>>, %arg3: memref<1x128xf32, #tpu.memory_space<vmem>>, %arg4: memref<128x32xbf16, #tpu.memory_space<vmem>>, %arg5: memref<1x32xf32, #tpu.memory_space<vmem>>, %arg6: memref<16x32xf32, #tpu.memory_space<vmem>>) attributes {dimension_semantics = [#tpu.dimension_semantics<parallel>], iteration_bounds = array<i64: 1>, scalar_prefetch = 0 : i64, scratch_operands = 0 : i64, tpu.core_type = #tpu.core_type<tc>, window_params = [{transform_indices = @transform_0, window_bounds = array<i64: 16, 32>}, {pipeline_mode = #tpu.pipeline_mode<synchronous>, transform_indices = @transform_1, window_bounds = array<i64: 32, 128>}, {pipeline_mode = #tpu.pipeline_mode<synchronous>, transform_indices = @transform_2, window_bounds = array<i64: 1, 128>}, {pipeline_mode = #tpu.pipeline_mode<synchronous>, transform_indices = @transform_3, window_bounds = array<i64: 128, 32>}, {pipeline_mode = #tpu.pipeline_mode<synchronous>, transform_indices = @transform_4, window_bounds = array<i64: 1, 32>}, {transform_indices = @transform_5, window_bounds = array<i64: 16, 32>}]} {
    %c0 = arith.constant 0 : index
    %c0_0 = arith.constant 0 : index
    %0 = vector.load %arg1[%c0, %c0_0] : memref<16x32xbf16, #tpu.memory_space<vmem>>, vector<16x32xbf16>
    %c0_1 = arith.constant 0 : index
    %c0_2 = arith.constant 0 : index
    %1 = vector.load %arg2[%c0_1, %c0_2] : memref<32x128xbf16, #tpu.memory_space<vmem>>, vector<32x128xbf16>
    %cst = arith.constant dense<0.000000e+00> : vector<16x128xf32>
    %2 = tpu.matmul %0, %1, %cst {dimension_numbers = #tpu.dot_dimension_numbers<[1], [0], [0], [1], [0, 0, 1, 1], [], []>} : vector<16x32xbf16>, vector<32x128xbf16>, vector<16x128xf32> -> vector<16x128xf32>
    %c0_3 = arith.constant 0 : index
    %c0_4 = arith.constant 0 : index
    %3 = vector.load %arg3[%c0_3, %c0_4] : memref<1x128xf32, #tpu.memory_space<vmem>>, vector<1x128xf32>
    %4 = vector.broadcast %3 : vector<1x128xf32> to vector<16x128xf32>
    %5 = arith.addf %2, %4 : vector<16x128xf32>
    %cst_5 = arith.constant 5.000000e-01 : f32
    %6 = vector.broadcast %cst_5 : f32 to vector<16x128xf32>
    %7 = arith.mulf %6, %5 : vector<16x128xf32>
    %cst_6 = arith.constant 4.471500e-02 : f32
    %8 = vector.broadcast %cst_6 : f32 to vector<16x128xf32>
    %9 = arith.mulf %8, %5 : vector<16x128xf32>
    %10 = arith.mulf %9, %5 : vector<16x128xf32>
    %11 = arith.mulf %10, %5 : vector<16x128xf32>
    %12 = arith.addf %5, %11 : vector<16x128xf32>
    %cst_7 = arith.constant 0.797884583 : f32
    %13 = vector.broadcast %cst_7 : f32 to vector<16x128xf32>
    %14 = arith.mulf %13, %12 : vector<16x128xf32>
    %15 = math.tanh %14 : vector<16x128xf32>
    %cst_8 = arith.constant 1.000000e+00 : f32
    %16 = vector.broadcast %cst_8 : f32 to vector<16x128xf32>
    %17 = arith.addf %16, %15 : vector<16x128xf32>
    %18 = arith.mulf %7, %17 : vector<16x128xf32>
    %19 = arith.truncf %18 : vector<16x128xf32> to vector<16x128xbf16>
    %c0_9 = arith.constant 0 : index
    %c0_10 = arith.constant 0 : index
    %20 = vector.load %arg4[%c0_9, %c0_10] : memref<128x32xbf16, #tpu.memory_space<vmem>>, vector<128x32xbf16>
    %cst_11 = arith.constant dense<0.000000e+00> : vector<16x32xf32>
    %21 = tpu.matmul %19, %20, %cst_11 {dimension_numbers = #tpu.dot_dimension_numbers<[1], [0], [0], [1], [0, 0, 1, 1], [], []>} : vector<16x128xbf16>, vector<128x32xbf16>, vector<16x32xf32> -> vector<16x32xf32>
    %c0_12 = arith.constant 0 : index
    %c0_13 = arith.constant 0 : index
    %22 = vector.load %arg5[%c0_12, %c0_13] : memref<1x32xf32, #tpu.memory_space<vmem>>, vector<1x32xf32>
    %23 = vector.broadcast %22 : vector<1x32xf32> to vector<16x32xf32>
    %24 = arith.addf %21, %23 : vector<16x32xf32>
    %c0_14 = arith.constant 0 : index
    %c0_15 = arith.constant 0 : index
    %25 = vector.load %arg6[%c0_14, %c0_15] : memref<16x32xf32, #tpu.memory_space<vmem>>, vector<16x32xf32>
    tpu.vector_store %arg6[%c0_14, %c0_15], %24 {strides = array<i32>} : memref<16x32xf32, #tpu.memory_space<vmem>>, vector<16x32xf32>,
    return
  }
  func.func @transform_0(%arg0: i32) -> (i32, i32) {
    %c0_i32 = arith.constant 0 : i32
    %c0_i32_0 = arith.constant 0 : i32
    return %arg0, %c0_i32 : i32, i32
  }
  func.func @transform_1(%arg0: i32) -> (i32, i32) {
    %c0_i32 = arith.constant 0 : i32
    %c0_i32_0 = arith.constant 0 : i32
    %c0_i32_1 = arith.constant 0 : i32
    return %c0_i32, %c0_i32_0 : i32, i32
  }
  func.func @transform_2(%arg0: i32) -> (i32, i32) {
    %c0_i32 = arith.constant 0 : i32
    %c0_i32_0 = arith.constant 0 : i32
    %c0_i32_1 = arith.constant 0 : i32
    return %c0_i32, %c0_i32_0 : i32, i32
  }
  func.func @transform_3(%arg0: i32) -> (i32, i32) {
    %c0_i32 = arith.constant 0 : i32
    %c0_i32_0 = arith.constant 0 : i32
    %c0_i32_1 = arith.constant 0 : i32
    return %c0_i32, %c0_i32_0 : i32, i32
  }
  func.func @transform_4(%arg0: i32) -> (i32, i32) {
    %c0_i32 = arith.constant 0 : i32
    %c0_i32_0 = arith.constant 0 : i32
    %c0_i32_1 = arith.constant 0 : i32
    return %c0_i32, %c0_i32_0 : i32, i32
  }
  func.func @transform_5(%arg0: i32) -> (i32, i32) {
    %c0_i32 = arith.constant 0 : i32
    %c0_i32_0 = arith.constant 0 : i32
    return %arg0, %c0_i32 : i32, i32
  }
}

</mosaic_0001>

<bundles_post_ra>
// kernel: mlp_pallas.1
= control target key start
LH: loop header
LB: loop body
LE: loop exit
PB: predicated region body
PF: predicated region fallthrough
CT: control target
= control target key end

     0   :  { %v344_v1 = vmov 0.0   ;;  %vm345_vm0 = vmmov 0   ;;  %vm52_vm1 = vcmask 261120   ;;  %s433_s0 = inlined_call_operand.vmem [shape: bf16[16,32], index: 0, kind: input, shape index: {}]   ;;  %s434_s1 = inlined_call_operand.vmem [shape: bf16[32,128], index: 1, kind: input, shape index: {}]   ;;  %s435_s2 = inlined_call_operand.vmem [shape: f32[1,128], index: 2, kind: input, shape index: {}]   ;;  %s436_s3 = inlined_call_operand.vmem [shape: bf16[128,32], index: 3, kind: input, shape index: {}]   ;;  %s437_s4 = inlined_call_operand.vmem [shape: f32[1,32], index: 4, kind: input, shape index: {}]   ;;  %s438_s5 = inlined_call_operand.hbm [shape: f32[16,32], index: 5, kind: output, shape index: {}]  }
   0x1   :  { %v305_v0 = vld [vmem:[%s434_s1] sm:$0xff]   ;;  %272 = vmatprep.subr.bf16.mxu0 %v344_v1  ;;  %280 = vmatprep.subr.bf16.mxu1 %v344_v1  ;;  %v306_v2 = vld [vmem:[%s434_s1 + $0x8] sm:$0xff]  }
   0x2   :  { %273 = vmatpush3.bf16.msra.mxu0 %v305_v0  ;;  %276 = vmatprep.mubr.msk.bf16.mxu0 %vm345_vm0, %v344_v1  ;;  %v307_v3 = vld [vmem:[%s433_s0] sm:$0xff]  }
   0x3   :  { %274 = vmatprep.subr.bf16.mxu0 %v344_v1  ;;  %296 = vmatprep.mubr.msk.bf16.mxu1 %vm345_vm0, %v344_v1 }
   0x6   :  { %275 = vmatpush3.bf16.msra.mxu0 %v306_v2 }
   0x7   :  { %10 = vsyncpa [#allocation3], 0  ;;  %v308_v4 = vld [vmem:[%s436_s3] sm:$0xff]   ;;  %v309_v5 = vld [vmem:[%s436_s3 + $0x8] sm:$0xff]   ;;  %s346_s15 = smov [#allocation2]  }
   0x8   :  { %281 = vmatpush3.bf16.msra.mxu1 %v308_v4  ;;  %v310_v6 = vld [vmem:[%s436_s3 + $0x10] sm:$0xff]   ;;  %v311_v7 = vld [vmem:[%s436_s3 + $0x18] sm:$0xff]   ;;  %v312_v8 = vld [vmem:[%s436_s3 + $0x20] sm:$0xff]   ;;  %s235_s16 = sshll.u32 %s346_s15, 4  ;;  %s236_s16 = int_to_ptr.vmem [resolvable:$true] %s235_s16 }
   0x9   :  { %277 = vmatmul.mubr.msk.bf16.vlgmr.msra.gmra.mrb[0].mxu0 %vm52_vm1, %v307_v3  ;;  %282 = vmatprep.subr.bf16.mxu1 %v344_v1  ;;  %v313_v9 = vld [vmem:[%s436_s3 + $0x28] sm:$0xff]   ;;  %v314_v10 = vld [vmem:[%s436_s3 + $0x30] sm:$0xff]   ;;  %v315_v11 = vld [vmem:[%s436_s3 + $0x38] sm:$0xff]   ;;  %s320_s17 = scalar_lea.vmem %s236_s16, 256  ;;  %p325_p1 = scmp.lt.s32.totalorder %s236_s16, %s236_s16 }
   0xa   :  { %v246_v12 = vld [vmem:[%s435_s2] ss:$0 sm:$0xff]  ;;  %p321_p0 = scmp.ne.s32.totalorder %s236_s16, %s320_s17  ;;  %p326_p2 = scmp.lt.s32.totalorder %s320_s17, %s320_s17 }
   0xb   :  { %v251_v38 = vld [vmem:[%s437_s4] ss:$0 sm:$0xff] }
   0xc   :  { %283 = vmatpush3.bf16.msra.mxu1 %v309_v5  ;;  %p327_p3 = por %p326_p2, %p325_p1 }
   0xd   :  { %284 = vmatprep.subr.bf16.mxu1 %v344_v1 }
   0xe   :  { %p328_p4 = pnand %p327_p3, %p321_p0 }
  0x10   :  { %285 = vmatpush3.bf16.msra.mxu1 %v310_v6 }
  0x11   :  { %286 = vmatprep.subr.bf16.mxu1 %v344_v1 }
  0x14   :  { %287 = vmatpush3.bf16.msra.mxu1 %v311_v7 }
  0x15   :  { %288 = vmatprep.subr.bf16.mxu1 %v344_v1 }
  0x18   :  { %289 = vmatpush3.bf16.msra.mxu1 %v312_v8 }
  0x19   :  { %290 = vmatprep.subr.bf16.mxu1 %v344_v1 }
  0x1c   :  { %291 = vmatpush3.bf16.msra.mxu1 %v313_v9 }
  0x1d   :  { %292 = vmatprep.subr.bf16.mxu1 %v344_v1 }
  0x20   :  { %293 = vmatpush3.bf16.msra.mxu1 %v314_v10 }
  0x21   :  { %294 = vmatprep.subr.bf16.mxu1 %v344_v1 }
  0x24   :  { %295 = vmatpush3.bf16.msra.mxu1 %v315_v11 }
  0xdc   :  { %v90_v13 = vpop.f32.mrb[0].mxu0 }
  0xdd   :  { %v91_v14 = vadd.f32 %v246_v12, %v90_v13  ;;  %v278_v15 = vpop.f32.mrb[1].mxu0 }
  0xde   :  { %v93_v16 = vpop.f32.mrb[2].mxu0 }
  0xdf   :  { %v99_v17 = vmul.f32 0.044715, %v91_v14  ;;  %v94_v18 = vadd.f32 %v246_v12, %v93_v16  ;;  %v279_v19 = vpop.f32.mrb[3].mxu0  ;;  %v97_v32 = vmul.f32 0.5, %v91_v14 }
  0xe1   :  { %v101_v20 = vmul.f32 %v99_v17, %v91_v14  ;;  %v100_v21 = vmul.f32 0.044715, %v94_v18  ;;  %v98_v33 = vmul.f32 0.5, %v94_v18 }
  0xe3   :  { %v103_v22 = vmul.f32 %v101_v20, %v91_v14  ;;  %v102_v23 = vmul.f32 %v100_v21, %v94_v18 }
  0xe5   :  { %v104_v24 = vmul.f32 %v102_v23, %v94_v18  ;;  %v105_v25 = vadd.f32 %v103_v22, %v91_v14 }
  0xe7   :  { %v106_v26 = vadd.f32 %v104_v24, %v94_v18  ;;  %v107_v27 = vmul.f32 0.7978846, %v105_v25 }
  0xe9   :  { %v108_v28 = vmul.f32 0.7978846, %v106_v26  ;;  %316 = vtanh.f32 %v107_v27 }
  0xeb   :  { %318 = vtanh.f32 %v108_v28 }
  0xf3   :  { %v317_v29 = vpop.eup %316 }
  0xf4   :  { %v111_v30 = vadd.f32 1.0, %v317_v29 }
  0xf5   :  { %v319_v31 = vpop.eup %318 }
  0xf6   :  { %v112_v34 = vadd.f32 1.0, %v319_v31  ;;  %v113_v35 = vmul.f32 %v111_v30, %v97_v32 }
  0xf8   :  { %v114_v36 = vmul.f32 %v112_v34, %v98_v33 }
  0xfa   :  { %v115_v37 = vpack.c.bf16 %v114_v36, %v113_v35 }
  0xfc   :  { %297 = vmatmul.mubr.bf16.vlgmr.msra.gmra.mrb[0].mxu1 %v115_v37 }
 0x1cf   :  { %v221_v39 = vpop.f32.mrb[0].mxu1 }
 0x1d0   :  { %v222_v40 = vadd.f32 %v251_v38, %v221_v39  ;;  %v298_v41 = vpop.f32.mrb[1].mxu1 }
 0x1d1   :  { %v224_v42 = vpop.f32.mrb[2].mxu1 }
 0x1d2   :  { %228 = vst.msk [vmem:[#allocation2] sm:$0xff] %vm52_vm1, %v222_v40  ;;  %v225_v43 = vadd.f32 %v251_v38, %v224_v42  ;;  %v299_v44 = vpop.f32.mrb[3].mxu1 }
 0x1d4   :  { %229 = vst.msk [vmem:[#allocation2 + $0x8] sm:$0xff] %vm52_vm1, %v225_v43 }
 0x1d5   :  { %331 = shalt.err (!%p328_p4)
}
 0x1d6   :  { %s332_s19 = scalar_lea.hbm %s438_s5, 256 }
 0x1d7   :  { %p333_p5 = scmp.ne.s32.totalorder %s438_s5, %s332_s19  ;;  %p336_p6 = scmp.lt.u32.totalorder %s332_s19, %s438_s5 }
 0x1d9   :  { %p338_p7 = pnand %p336_p6, %p333_p5 }
 0x1db   :  { %341 = shalt.err (!%p338_p7)
}
 0x1dc   :  { %s347_s24 = smov 128   ;;  %s348_s25 = smov 8  }
 0x1dd   :  { %241 = dma.vmem_to_hbm [thread:$0]  %s236_s16, 256, %s438_s5, [#allocation3], %s347_s24, %s347_s24, %s348_s25  }
 0x1de   :  { %342 = dma.done.wait [#allocation3], 256  }
 0x1df   :  { %343 = vsyncadd [#allocation3], 4294967040 }
 0x1e0   :  { %245 = vsyncpa [#allocation3], 1 }

</bundles_post_ra>
